<compile_context>
chip_gen: v7x
topology: tpu7x:2x2x1
jax: 0.10.0
libtpu: 0.0.40
codegen_flags: <defaults>
</compile_context>

<pallas_src>
import jax
import jax.numpy as jnp
from jax.experimental import pallas as pl
from jax.experimental.pallas import tpu as pltpu


def _round_up(x, m):
    return ((x + m - 1) // m) * m


def dil_conv(x, w_dw, w_pw, bn_gamma, bn_beta, bn_mean, bn_var, *,
             kernel_size, stride, padding, dilation, eps=1e-5,
             tile_target=1024):
    """DilConv forward: ReLU -> depthwise dilated conv (groups=C_in, no bias)
    -> pointwise 1x1 conv (no bias) -> BatchNorm2d (inference-mode).

    x     : (N, C_in, H, W)
    w_dw  : (C_in, 1, k, k)      depthwise weights (PyTorch layout)
    w_pw  : (C_out, C_in, 1, 1)  pointwise weights
    bn_*  : (C_out,)             BatchNorm2d affine params + running stats
    """
    N, C_in, H, W = x.shape
    C_out = w_pw.shape[0]
    k, s, p, d = kernel_size, stride, padding, dilation

    Hp, Wp = H + 2 * p, W + 2 * p
    OH1, OW1 = Hp - d * (k - 1), Wp - d * (k - 1)   # stride-1 conv output size
    assert OH1 > 0 and OW1 > 0, "kernel/dilation too large for input"

    # Flattened-tap offsets for the dilated depthwise conv (row-major spatial).
    offs = tuple(kh * d * Wp + kw * d for kh in range(k) for kw in range(k))
    max_off = offs[-1]
    kk = k * k

    # ---- tiling of the flattened spatial axis -------------------------------
    lout = OH1 * Wp                                  # flattened stride-1 rows
    halo_w = _round_up(max(max_off, 1), 128)         # 128-aligned halo width
    lout128 = _round_up(lout, 128)
    n_l = max(1, pl.cdiv(lout128, tile_target))      # number of L tiles
    tile_l = _round_up(pl.cdiv(lout128, n_l), halo_w)  # multiple of halo_w (and 128)
    lout_pad = n_l * tile_l                          # lane-dense output width
    l_in_total = lout_pad + halo_w                   # max flat input index needed

    # ---- single pad in the INPUT dtype (no f32 upcast pass over HBM) --------
    rows_total = max(Hp, pl.cdiv(l_in_total, Wp))
    xpad = jnp.pad(x, ((0, 0), (0, 0), (p, p + (rows_total - Hp)), (p, p)))
    xf = xpad.reshape(N, C_in, rows_total * Wp)      # >= l_in_total lanes long

    # Compute dtype: bf16 depthwise path for bf16 inputs (v6e/v7x), f32 else.
    cdtype = jnp.bfloat16 if x.dtype == jnp.bfloat16 else jnp.float32

    wdw = w_dw.reshape(C_in, kk).astype(cdtype)      # taps, row-major (kh, kw)

    # Fold inference-mode BatchNorm scale into the pointwise weights; keep
    # only the bias add in-kernel.
    # TODO(synk): training-mode BatchNorm (batch statistics + running-stat
    # updates) is not implemented; inference-mode running stats are folded in.
    inv_std = 1.0 / jnp.sqrt(bn_var.astype(jnp.float32) + eps)
    scale = bn_gamma.astype(jnp.float32) * inv_std                 # (C_out,)
    wpw = (w_pw.reshape(C_out, C_in).astype(jnp.float32)
           * scale[:, None]).astype(cdtype)                        # BN-scaled
    bias = (bn_beta.astype(jnp.float32)
            - bn_mean.astype(jnp.float32) * scale).reshape(C_out, 1)

    halo_blocks_per_tile = tile_l // halo_w          # integer by construction

    # ---- fused kernel: ReLU + depthwise dilated conv + 1x1 conv + BN bias ---
    def kernel(xm_ref, xh_ref, wdw_ref, wpw_ref, bias_ref, o_ref):
        # Main tile + 128-aligned halo, ReLU'd, in the compute dtype.
        xr = jnp.concatenate([xm_ref[...], xh_ref[...]], axis=-1)
        xr = jnp.maximum(xr, 0).astype(cdtype)       # (C_in, tile_l + halo_w)
        wdw_v = wdw_ref[...]                         # (C_in, k*k)

        # Depthwise dilated conv: k*k statically-offset lane slices on the
        # VPU; 3 independent partial accumulators break the serial add chain.
        n_part = 3
        parts = []
        for p0 in range(n_part):
            acc_p = None
            for t in range(p0, kk, n_part):
                o = offs[t]
                term = wdw_v[:, t:t + 1] * xr[:, o:o + tile_l]
                acc_p = term if acc_p is None else acc_p + term
            if acc_p is not None:
                parts.append(acc_p)
        acc = parts[0]
        for acc_p in parts[1:]:
            acc = acc + acc_p                        # (C_in, tile_l)

        # Pointwise 1x1 conv (BN scale pre-folded) on the MXU, f32 accumulate.
        z = jnp.dot(wpw_ref[...], acc, preferred_element_type=jnp.float32)
        # Folded-BN bias, lane-dense (unmasked) store.
        o_ref[...] = (z + bias_ref[...]).astype(o_ref.dtype)

    out_flat = pl.pallas_call(
        kernel,
        out_shape=jax.ShapeDtypeStruct((N, C_out, lout_pad), x.dtype),
        grid=(N, n_l),
        in_specs=[
            # main lane tile of the flattened (ReLU-pending) input
            pl.BlockSpec((None, C_in, tile_l), lambda n, j: (n, 0, j)),
            # 128-aligned halo block covering the stencil overhang
            pl.BlockSpec((None, C_in, halo_w),
                         lambda n, j: (n, 0, (j + 1) * halo_blocks_per_tile)),
            pl.BlockSpec((C_in, kk), lambda n, j: (0, 0)),
            pl.BlockSpec((C_out, C_in), lambda n, j: (0, 0)),
            pl.BlockSpec((C_out, 1), lambda n, j: (0, 0)),
        ],
        out_specs=pl.BlockSpec((None, C_out, tile_l), lambda n, j: (n, 0, j)),
        compiler_params=pltpu.CompilerParams(
            dimension_semantics=("parallel", "parallel"),
            vmem_limit_bytes=32 * 1024 * 1024),
    )(xf, xf, wdw, wpw, bias)

    # ---- un-flatten, drop wrap-around junk columns, apply stride ------------
    out = out_flat[:, :, :lout].reshape(N, C_out, OH1, Wp)[:, :, :, :OW1]
    if s > 1:
        # Exact: strided conv == stride-1 conv subsampled (1x1 conv and BN are
        # per-pixel, so subsampling commutes).
        out = out[:, :, ::s, ::s]
    return out


def dilconv_reference(x, w_dw, w_pw, gamma, beta, mean, var, *,
                      stride, padding, dilation, eps=1e-5):
    """Pure-JAX reference matching the PyTorch DilConv forward (eval-mode BN)."""
    xr = jnp.maximum(x, 0.0)
    dn = ("NCHW", "OIHW", "NCHW")
    dw = jax.lax.conv_general_dilated(
        xr, w_dw, window_strides=(stride, stride),
        padding=((padding, padding), (padding, padding)),
        rhs_dilation=(dilation, dilation), dimension_numbers=dn,
        feature_group_count=x.shape[1],
        precision=jax.lax.Precision.HIGHEST)
    pw = jax.lax.conv_general_dilated(
        dw, w_pw, window_strides=(1, 1), padding="VALID",
        dimension_numbers=dn, precision=jax.lax.Precision.HIGHEST)
    scale = gamma / jnp.sqrt(var + eps)
    bias = beta - mean * scale
    return pw * scale[None, :, None, None] + bias[None, :, None, None]


if __name__ == "__main__":
    key = jax.random.PRNGKey(0)
    k_x, k_dw, k_pw, k_g, k_b, k_m, k_v = jax.random.split(key, 7)

    # Small DARTS-like config: dil_conv_3x3 (k=3, stride=1, padding=2, dilation=2)
    N, C_in, H, W = 2, 4, 16, 16
    C_out = 8
    kernel_size, stride, padding, dilation = 3, 1, 2, 2

    x = jax.random.normal(k_x, (N, C_in, H, W), dtype=jnp.float32)
    w_dw = 0.3 * jax.random.normal(k_dw, (C_in, 1, kernel_size, kernel_size),
                                   dtype=jnp.float32)
    w_pw = 0.3 * jax.random.normal(k_pw, (C_out, C_in, 1, 1), dtype=jnp.float32)
    gamma = 1.0 + 0.1 * jax.random.normal(k_g, (C_out,), dtype=jnp.float32)
    beta = 0.1 * jax.random.normal(k_b, (C_out,), dtype=jnp.float32)
    mean = 0.1 * jax.random.normal(k_m, (C_out,), dtype=jnp.float32)
    var = jax.random.uniform(k_v, (C_out,), jnp.float32, 0.5, 1.5)

    y = dil_conv(x, w_dw, w_pw, gamma, beta, mean, var,
                 kernel_size=kernel_size, stride=stride,
                 padding=padding, dilation=dilation)
    y = jax.block_until_ready(y)

    y_ref = dilconv_reference(x, w_dw, w_pw, gamma, beta, mean, var,
                              stride=stride, padding=padding, dilation=dilation)
    y_ref = jax.block_until_ready(y_ref)

    assert y.shape == (N, C_out, 16, 16), y.shape
    assert y.dtype == x.dtype
    err = float(jnp.max(jnp.abs(y - y_ref)))
    assert err < 5e-2, f"max abs err {err}"

    print("KERNEL_OK")
</pallas_src>

<mosaic_0001>
module attributes {stable_mosaic.version = 11 : i64} {
  func.func @kernel(%arg0: i32, %arg1: i32, %arg2: memref<1x4x384xf32, #tpu.memory_space<vmem>>, %arg3: memref<1x4x128xf32, #tpu.memory_space<vmem>>, %arg4: memref<4x9xf32, #tpu.memory_space<vmem>>, %arg5: memref<8x4xf32, #tpu.memory_space<vmem>>, %arg6: memref<8x1xf32, #tpu.memory_space<vmem>>, %arg7: memref<1x8x384xf32, #tpu.memory_space<vmem>>) attributes {dimension_semantics = [#tpu.dimension_semantics<parallel>, #tpu.dimension_semantics<parallel>], iteration_bounds = array<i64: 2, 1>, scalar_prefetch = 0 : i64, scratch_operands = 0 : i64, tpu.core_type = #tpu.core_type<tc>, window_params = [{transform_indices = @transform_0, window_bounds = array<i64: 1, 4, 384>}, {transform_indices = @transform_1, window_bounds = array<i64: 1, 4, 128>}, {pipeline_mode = #tpu.pipeline_mode<synchronous>, transform_indices = @transform_2, window_bounds = array<i64: 4, 9>}, {pipeline_mode = #tpu.pipeline_mode<synchronous>, transform_indices = @transform_3, window_bounds = array<i64: 8, 4>}, {pipeline_mode = #tpu.pipeline_mode<synchronous>, transform_indices = @transform_4, window_bounds = array<i64: 8, 1>}, {transform_indices = @transform_5, window_bounds = array<i64: 1, 8, 384>}]} {
    %c0 = arith.constant 0 : index
    %c0_0 = arith.constant 0 : index
    %c0_1 = arith.constant 0 : index
    %0 = vector.load %arg2[%c0, %c0_0, %c0_1] : memref<1x4x384xf32, #tpu.memory_space<vmem>>, vector<1x4x384xf32>
    %1 = vector.shape_cast %0 : vector<1x4x384xf32> to vector<4x384xf32>
    %c0_2 = arith.constant 0 : index
    %c0_3 = arith.constant 0 : index
    %c0_4 = arith.constant 0 : index
    %2 = vector.load %arg3[%c0_2, %c0_3, %c0_4] : memref<1x4x128xf32, #tpu.memory_space<vmem>>, vector<1x4x128xf32>
    %3 = vector.shape_cast %2 : vector<1x4x128xf32> to vector<4x128xf32>
    %4 = tpu.concatenate %1, %3 in 1 : vector<4x384xf32>, vector<4x128xf32> -> vector<4x512xf32>
    %cst = arith.constant 0.000000e+00 : f32
    %5 = vector.broadcast %cst : f32 to vector<4x512xf32>
    %6 = arith.maximumf %4, %5 : vector<4x512xf32>
    %c0_5 = arith.constant 0 : index
    %c0_6 = arith.constant 0 : index
    %7 = vector.load %arg4[%c0_5, %c0_6] : memref<4x9xf32, #tpu.memory_space<vmem>>, vector<4x9xf32>
    %8 = vector.extract_strided_slice %7 {offsets = [0, 0], sizes = [4, 1], strides = [1, 1]} : vector<4x9xf32> to vector<4x1xf32>
    %9 = vector.extract_strided_slice %6 {offsets = [0, 0], sizes = [4, 384], strides = [1, 1]} : vector<4x512xf32> to vector<4x384xf32>
    %10 = vector.broadcast %8 : vector<4x1xf32> to vector<4x384xf32>
    %11 = arith.mulf %10, %9 : vector<4x384xf32>
    %12 = vector.extract_strided_slice %7 {offsets = [0, 3], sizes = [4, 1], strides = [1, 1]} : vector<4x9xf32> to vector<4x1xf32>
    %13 = vector.extract_strided_slice %6 {offsets = [0, 40], sizes = [4, 384], strides = [1, 1]} : vector<4x512xf32> to vector<4x384xf32>
    %14 = vector.broadcast %12 : vector<4x1xf32> to vector<4x384xf32>
    %15 = arith.mulf %14, %13 : vector<4x384xf32>
    %16 = arith.addf %11, %15 : vector<4x384xf32>
    %17 = vector.extract_strided_slice %7 {offsets = [0, 6], sizes = [4, 1], strides = [1, 1]} : vector<4x9xf32> to vector<4x1xf32>
    %18 = vector.extract_strided_slice %6 {offsets = [0, 80], sizes = [4, 384], strides = [1, 1]} : vector<4x512xf32> to vector<4x384xf32>
    %19 = vector.broadcast %17 : vector<4x1xf32> to vector<4x384xf32>
    %20 = arith.mulf %19, %18 : vector<4x384xf32>
    %21 = arith.addf %16, %20 : vector<4x384xf32>
    %22 = vector.extract_strided_slice %7 {offsets = [0, 1], sizes = [4, 1], strides = [1, 1]} : vector<4x9xf32> to vector<4x1xf32>
    %23 = vector.extract_strided_slice %6 {offsets = [0, 2], sizes = [4, 384], strides = [1, 1]} : vector<4x512xf32> to vector<4x384xf32>
    %24 = vector.broadcast %22 : vector<4x1xf32> to vector<4x384xf32>
    %25 = arith.mulf %24, %23 : vector<4x384xf32>
    %26 = vector.extract_strided_slice %7 {offsets = [0, 4], sizes = [4, 1], strides = [1, 1]} : vector<4x9xf32> to vector<4x1xf32>
    %27 = vector.extract_strided_slice %6 {offsets = [0, 42], sizes = [4, 384], strides = [1, 1]} : vector<4x512xf32> to vector<4x384xf32>
    %28 = vector.broadcast %26 : vector<4x1xf32> to vector<4x384xf32>
    %29 = arith.mulf %28, %27 : vector<4x384xf32>
    %30 = arith.addf %25, %29 : vector<4x384xf32>
    %31 = vector.extract_strided_slice %7 {offsets = [0, 7], sizes = [4, 1], strides = [1, 1]} : vector<4x9xf32> to vector<4x1xf32>
    %32 = vector.extract_strided_slice %6 {offsets = [0, 82], sizes = [4, 384], strides = [1, 1]} : vector<4x512xf32> to vector<4x384xf32>
    %33 = vector.broadcast %31 : vector<4x1xf32> to vector<4x384xf32>
    %34 = arith.mulf %33, %32 : vector<4x384xf32>
    %35 = arith.addf %30, %34 : vector<4x384xf32>
    %36 = vector.extract_strided_slice %7 {offsets = [0, 2], sizes = [4, 1], strides = [1, 1]} : vector<4x9xf32> to vector<4x1xf32>
    %37 = vector.extract_strided_slice %6 {offsets = [0, 4], sizes = [4, 384], strides = [1, 1]} : vector<4x512xf32> to vector<4x384xf32>
    %38 = vector.broadcast %36 : vector<4x1xf32> to vector<4x384xf32>
    %39 = arith.mulf %38, %37 : vector<4x384xf32>
    %40 = vector.extract_strided_slice %7 {offsets = [0, 5], sizes = [4, 1], strides = [1, 1]} : vector<4x9xf32> to vector<4x1xf32>
    %41 = vector.extract_strided_slice %6 {offsets = [0, 44], sizes = [4, 384], strides = [1, 1]} : vector<4x512xf32> to vector<4x384xf32>
    %42 = vector.broadcast %40 : vector<4x1xf32> to vector<4x384xf32>
    %43 = arith.mulf %42, %41 : vector<4x384xf32>
    %44 = arith.addf %39, %43 : vector<4x384xf32>
    %45 = vector.extract_strided_slice %7 {offsets = [0, 8], sizes = [4, 1], strides = [1, 1]} : vector<4x9xf32> to vector<4x1xf32>
    %46 = vector.extract_strided_slice %6 {offsets = [0, 84], sizes = [4, 384], strides = [1, 1]} : vector<4x512xf32> to vector<4x384xf32>
    %47 = vector.broadcast %45 : vector<4x1xf32> to vector<4x384xf32>
    %48 = arith.mulf %47, %46 : vector<4x384xf32>
    %49 = arith.addf %44, %48 : vector<4x384xf32>
    %50 = arith.addf %21, %35 : vector<4x384xf32>
    %51 = arith.addf %50, %49 : vector<4x384xf32>
    %c0_7 = arith.constant 0 : index
    %c0_8 = arith.constant 0 : index
    %52 = vector.load %arg5[%c0_7, %c0_8] : memref<8x4xf32, #tpu.memory_space<vmem>>, vector<8x4xf32>
    %cst_9 = arith.constant dense<0.000000e+00> : vector<8x384xf32>
    %53 = tpu.matmul %52, %51, %cst_9 {dimension_numbers = #tpu.dot_dimension_numbers<[1], [0], [0], [1], [0, 0, 1, 1], [], []>} : vector<8x4xf32>, vector<4x384xf32>, vector<8x384xf32> -> vector<8x384xf32>
    %c0_10 = arith.constant 0 : index
    %c0_11 = arith.constant 0 : index
    %54 = vector.load %arg6[%c0_10, %c0_11] : memref<8x1xf32, #tpu.memory_space<vmem>>, vector<8x1xf32>
    %55 = vector.broadcast %54 : vector<8x1xf32> to vector<8x384xf32>
    %56 = arith.addf %53, %55 : vector<8x384xf32>
    %c0_12 = arith.constant 0 : index
    %c0_13 = arith.constant 0 : index
    %c0_14 = arith.constant 0 : index
    %57 = vector.load %arg7[%c0_12, %c0_13, %c0_14] : memref<1x8x384xf32, #tpu.memory_space<vmem>>, vector<1x8x384xf32>
    %58 = vector.shape_cast %57 : vector<1x8x384xf32> to vector<8x384xf32>
    %59 = vector.shape_cast %56 : vector<8x384xf32> to vector<1x8x384xf32>
    tpu.vector_store %arg7[%c0_12, %c0_13, %c0_14], %59 {strides = array<i32>} : memref<1x8x384xf32, #tpu.memory_space<vmem>>, vector<1x8x384xf32>,
    return
  }
  func.func @transform_0(%arg0: i32, %arg1: i32) -> (i32, i32, i32) {
    %c0_i32 = arith.constant 0 : i32
    %c0_i32_0 = arith.constant 0 : i32
    return %arg0, %c0_i32, %arg1 : i32, i32, i32
  }
  func.func @transform_1(%arg0: i32, %arg1: i32) -> (i32, i32, i32) {
    %c1_i32 = arith.constant 1 : i32
    %0 = arith.addi %arg1, %c1_i32 : i32
    %c3_i32 = arith.constant 3 : i32
    %1 = arith.muli %0, %c3_i32 : i32
    %c0_i32 = arith.constant 0 : i32
    %c0_i32_0 = arith.constant 0 : i32
    return %arg0, %c0_i32, %1 : i32, i32, i32
  }
  func.func @transform_2(%arg0: i32, %arg1: i32) -> (i32, i32) {
    %c0_i32 = arith.constant 0 : i32
    %c0_i32_0 = arith.constant 0 : i32
    %c0_i32_1 = arith.constant 0 : i32
    return %c0_i32, %c0_i32_0 : i32, i32
  }
  func.func @transform_3(%arg0: i32, %arg1: i32) -> (i32, i32) {
    %c0_i32 = arith.constant 0 : i32
    %c0_i32_0 = arith.constant 0 : i32
    %c0_i32_1 = arith.constant 0 : i32
    return %c0_i32, %c0_i32_0 : i32, i32
  }
  func.func @transform_4(%arg0: i32, %arg1: i32) -> (i32, i32) {
    %c0_i32 = arith.constant 0 : i32
    %c0_i32_0 = arith.constant 0 : i32
    %c0_i32_1 = arith.constant 0 : i32
    return %c0_i32, %c0_i32_0 : i32, i32
  }
  func.func @transform_5(%arg0: i32, %arg1: i32) -> (i32, i32, i32) {
    %c0_i32 = arith.constant 0 : i32
    %c0_i32_0 = arith.constant 0 : i32
    return %arg0, %c0_i32, %arg1 : i32, i32, i32
  }
}

</mosaic_0001>

<bundles_post_ra>
// kernel: tpu_custom_call.1
= control target key start
LH: loop header
LB: loop body
LE: loop exit
PB: predicated region body
PF: predicated region fallthrough
CT: control target
= control target key end

     0   :  { %s1531_s0 = inlined_call_operand.hbm [shape: f32[2,4,520], index: 0, kind: input, shape index: {}]   ;;  %s1532_s1 = inlined_call_operand.hbm [shape: f32[2,4,520], index: 1, kind: input, shape index: {}]   ;;  %s1533_s2 = inlined_call_operand.vmem [shape: f32[4,9], index: 2, kind: input, shape index: {}]   ;;  %s1534_s3 = inlined_call_operand.vmem [shape: f32[8,4], index: 3, kind: input, shape index: {}]   ;;  %s1535_s4 = inlined_call_operand.vmem [shape: f32[8,1], index: 4, kind: input, shape index: {}]   ;;  %s1536_s5 = inlined_call_operand.hbm [shape: f32[2,8,384], index: 5, kind: output, shape index: {}]  }
   0x1   :  { %1539 = sst [smem:[#allocation11_spill]] %s1531_s0 }
   0x2   :  { %10 = vsyncpa [#allocation3], 0 }
   0x3   :  { %12 = vsyncpa [#allocation3 + $0x1], 0 }
   0x4   :  { %13 = vsyncpa [#allocation6], 0 }
   0x5   :  { %15 = vsyncpa [#allocation6 + $0x1], 0 }
   0x6   :  { %16 = vsyncpa [#allocation4], 0 }
   0x7   :  { %18 = vsyncpa [#allocation4 + $0x1], 0  ;;  %s1194_s18 = smov 0   ;;  %s1196_s19 = smov 0  }
   0x8   :  { %s1198_s20 = smov 0   ;;  %s1200_s21 = smov 0  }
   0x9   :  { %s1202_s22 = smov 0   ;;  %s1204_s23 = smov 0  }
   0xa LB: > { %s876_s24 = sadd.s32 4294967295, %s1144_s23   ;;  %s877_s25 = sadd.s32 4294967294, %s1144_s23   ;;  %s1144_s23 = sphi %s1204_s23, %s24_s23   ;;  %s1140_s22 = sphi %s1202_s22, %s1557_s22   ;;  %s1136_s21 = sphi %s1200_s21, %s1556_s21   ;;  %s1132_s20 = sphi %s1198_s20, %s1555_s20   ;;  %s1128_s19 = sphi %s1196_s19, %s1554_s19   ;;  %s1124_s18 = sphi %s1194_s18, %s1553_s18  }
   0xb   : > { %s36_s26 = sadd.s32 1, %s1140_s22  ;;  %s45_s27 = sadd.s32 1, %s1132_s20 }
   0xc   : > { %p38_p0 = scmp.ge.s32.totalorder %s36_s26, 2  ;;  %p52_p1 = scmp.ne.s32.totalorder %s1132_s20, %s1128_s19 }
   0xd   : > { %p53_p2 = scmp.eq.s32.totalorder %s1144_s23, 0  ;;  %p58_p3 = scmp.ne.s32.totalorder %s1128_s19, %s1124_s18 }
   0xe   : > { %s1559_s26 = smov (%p38_p0, %s36_s26), 0  ;;  %p59_p5 = scmp.eq.s32.totalorder %s876_s24, 0 }
   0xf   : > { %p1235_p4 = por %p53_p2, %p52_p1  ;;  %s40_s29 = ssub.s32 %s1140_s22, %s1559_s26 }
  0x10   : > { %p179_p6 = scmp.eq.s32.totalorder %s876_s24, 1  ;;  %p43_p7 = scmp.eq.s32.totalorder %s40_s29, 0 }
  0x11   : > { %p1241_p8 = por %p59_p5, %p58_p3  ;;  %p185_p10 = scmp.eq.s32.totalorder %s877_s25, 1 }
  0x12   : > { %p1245_p9 = por %p179_p6, %p52_p1  ;;  %p922_p13 = scmp.lt.s32.totalorder %s1144_s23, 2 }
  0x13   : > { %s1541_s30 = scalar_select %p1241_p8, 1, 0 }
  0x14   : > { %s1542_s6 = scalar_select %p1245_p9, 1, 0 }
  0x15   : > { %s1250_s7 = scalar_select %p43_p7, %s1132_s20, %s45_s27  }
  0x16   : > { %p1252_p11 = por %p185_p10, %p58_p3  ;;  %s1259_s9 = sand.u32 1, %s1132_s20  }
  0x17   : > { %s900_s10 = smul.u32 12, %s1259_s9  ;;  %p1265_p0 = pnand %p922_p13, %p1235_p4 }
  0x18   : > { %s1543_s8 = scalar_select %p1252_p11, 1, 0 }
  0x19   : > { %s901_s11 = smul.u32 320, %s1140_s22  ;;  %s1545_s0 = sld [smem:[#allocation11_spill]] }
  0x1a   : > { %s218_s16 = scalar_lea.vmem [#allocation2], %s900_s10  ;;  %s215_s24 = scalar_lea.sflag [#allocation3], %s1259_s9 }
  0x1b   : > { %s234_s17 = sshll.u32 %s218_s16, 4  ;;  %p999_p3 = pneg %p1265_p0  ;;  %s1277_s17 = int_to_ptr.vmem [resolvable:$true] %s234_s17 }
  0x1f   : > { %s1275_s15 = scalar_lea.hbm %s1545_s0, %s901_s11  ;;  %s1002_s29 = scalar_lea.hbm %s1545_s0, 640 }
  0x20   : > { %s997_s25 = scalar_lea.hbm %s1275_s15, 192  ;;  %p1003_p6 = scmp.lt.u32.totalorder %s1275_s15, %s1545_s0 }
  0x21   : > { %p998_p2 = scmp.ne.s32.totalorder %s1275_s15, %s997_s25  ;;  %p1004_p7 = scmp.lt.u32.totalorder %s1002_s29, %s997_s25 }
  0x22   : > { %p1006_p13 = scmp.lt.u32.totalorder %s997_s25, %s1275_s15 }
  0x23   : > { %p1000_p4 = pnand %p999_p3, %p998_p2  ;;  %p1005_p10 = por %p1004_p7, %p1003_p6 }
  0x25   : > { %p1001_p5 = pneg %p1000_p4  ;;  %p1007_p12 = por %p1006_p13, %p1005_p10 }
  0x27   : > { %p1008_p1 = pnand %p1007_p12, %p1001_p5 }
  0x29   : > { %1011 = shalt.err (!%p1008_p1)
}
  0x2a   : > { %s1012_s10 = scalar_lea.vmem %s1277_s17, 192  ;;  %s1146_s16 = smov [#allocation2]  }
  0x2b   : > { %p1013_p2 = scmp.ne.s32.totalorder %s1277_s17, %s1012_s10  ;;  %s1017_s27 = sshll.u32 %s1146_s16, 4  ;;  %s1018_s27 = int_to_ptr.vmem [resolvable:$false] %s1017_s27 }
  0x2c   : > { %s1019_s28 = scalar_lea.vmem %s1018_s27, 384  ;;  %p1020_p9 = scmp.lt.s32.totalorder %s1277_s17, %s1018_s27 }
  0x2d   : > { %p1015_p4 = pnand %p1013_p2, %p999_p3  ;;  %p1021_p6 = scmp.lt.s32.totalorder %s1019_s28, %s1012_s10 }
  0x2f   : > { %p1016_p11 = pneg %p1015_p4  ;;  %p1022_p7 = por %p1021_p6, %p1020_p9 }
  0x31   : > { %p1023_p10 = pnand %p1022_p7, %p1016_p11 }
  0x33   : > { %1026 = shalt.err (!%p1023_p10)
}
  0x34   : > { %914 = dma.hbm_to_vmem [thread:$0]  (!%p1265_p0), %s1275_s15, 192, %s1277_s17, %s215_s24  }
  0x35   : > { %p261_p12 = scmp.lt.s32.totalorder %s1144_s23, 3  ;;  %s881_s25 = sshll.u32 %s1259_s9, 2 }
  0x36   : > { %s807_s14 = scalar_lea.hbm %s1532_s1, %s901_s11  ;;  %p1546_p9 = scmp.ge.s32.totalorder %s1144_s23, 1 }
  0x37   : > { %s1318_s16 = scalar_lea.hbm %s807_s14, 192  ;;  %s245_s27 = scalar_lea.vmem [#allocation5], %s881_s25 }
  0x38   : > { %p1314_p11 = pnand %p1546_p9, %p261_p12  ;;  %s256_s28 = sshll.u32 %s245_s27, 4  ;;  %s257_s28 = int_to_ptr.vmem [resolvable:$true] %s256_s28 }
  0x39   : > { %s242_s15 = scalar_lea.sflag [#allocation6], %s1259_s9  ;;  %s1057_s17 = scalar_lea.hbm %s807_s14, 256 }
  0x3a   : > { %s1547_s10 = scalar_select %p1314_p11, 1, 0 }
  0x3b   : > { %p1028_p1 = scmp.ne.s32.totalorder %s1318_s16, %s1057_s17  ;;  %s1032_s29 = scalar_lea.hbm %s1532_s1, 640 }
  0x3c   : > { %p1033_p2 = scmp.lt.u32.totalorder %s1318_s16, %s1532_s1  ;;  %p1034_p4 = scmp.lt.u32.totalorder %s1032_s29, %s1057_s17 }
  0x3d   : > { %p1030_p5 = pnand %p1028_p1, %p999_p3  ;;  %p1036_p7 = scmp.lt.u32.totalorder %s1057_s17, %s1318_s16 }
  0x3e   : > { %p1035_p6 = por %p1034_p4, %p1033_p2 }
  0x3f   : > { %p1031_p13 = pneg %p1030_p5 }
  0x40   : > { %p1037_p10 = por %p1036_p7, %p1035_p6 }
  0x42   : > { %p1038_p12 = pnand %p1037_p10, %p1031_p13 }
  0x44   : > { %1041 = shalt.err (!%p1038_p12)
}
  0x45   : > { %s1042_s9 = scalar_lea.vmem %s257_s28, 64  ;;  %s1147_s25 = smov [#allocation5]  }
  0x46   : > { %p1043_p9 = scmp.ne.s32.totalorder %s257_s28, %s1042_s9  ;;  %s1047_s14 = sshll.u32 %s1147_s25, 4  ;;  %s1048_s14 = int_to_ptr.vmem [resolvable:$false] %s1047_s14 }
  0x47   : > { %s1049_s27 = scalar_lea.vmem %s1048_s14, 128  ;;  %p1050_p8 = scmp.lt.s32.totalorder %s257_s28, %s1048_s14 }
  0x48   : > { %p1045_p1 = pnand %p1043_p9, %p999_p3  ;;  %p1051_p11 = scmp.lt.s32.totalorder %s1049_s27, %s1042_s9 }
  0x4a   : > { %p1046_p5 = pneg %p1045_p1  ;;  %p1052_p2 = por %p1051_p11, %p1050_p8 }
  0x4c   : > { %p1053_p4 = pnand %p1052_p2, %p1046_p5 }
  0x4e   : > { %1056 = shalt.err (!%p1053_p4)
}
  0x4f   : > { %917 = dma.hbm_to_vmem [thread:$0]  (!%p1265_p0), %s1318_s16, 64, %s257_s28, %s242_s15  }
  0x50   : > { %p1548_p13 = scmp.ne.s32.totalorder %s1547_s10, 0 }
  0x51   : > { %s1342_s0 = sand.u32 (!%p1548_p13), 1, %s1128_s19   ;;  %p1549_p8 = scmp.ne.s32.totalorder (!%p1548_p13), %s1541_s30, 0 }
  0x52   : > { %265 = sbr.rel (%p1548_p13) target bundleno = 722 (0x2d2), region = 40  ;;  %s268_s11 = scalar_lea.sflag (!%p1548_p13), [#allocation3], %s1342_s0 }
  0x53   : > { %s902_s17 = smul.u32 (!%p1548_p13), 12, %s1342_s0 }
  0x55   : > { %s1346_s24 = scalar_lea.vmem (!%p1548_p13), [#allocation2], %s902_s17 }
  0x59   : > { %1111 = dma.done.wait (%p1549_p8), %s268_s11, 192  }
  0x5a   : > { %1113 = vsyncadd (%p1549_p8), %s268_s11, 4294967104  ;;  %s884_s12 = sshll.u32 %s1342_s0, 2  ;;  %s277_s10 = scalar_lea.sflag [#allocation6], %s1342_s0 }
  0x5b   : > { %s1354_s16 = scalar_lea.vmem [#allocation5], %s884_s12 }
  0x5c   : > { %1115 = dma.done.wait (%p1549_p8), %s277_s10, 64  }
  0x5d   : > { %1117 = vsyncadd (%p1549_p8), %s277_s10, 4294967232  ;;  %v1148_v0 = vmov 4   ;;  %v1149_v1 = vmov 5   ;;  %v1363_v2 = vld [vmem:[%s1533_s2] sm:$0xf]  ;;  %v1150_v3 = vmov 7  }
  0x5e   : > { %987 = vset.pattern.permute.xlu0 %v1148_v0  ;;  %989 = vset.pattern.permute.xlu1 %v1149_v1  ;;  %v1151_v4 = vmov 8   ;;  %v1152_v5 = vmov 3   ;;  %v1153_v6 = vmov 1   ;;  %v1154_v7 = vmov 6   ;;  %v320_v10 = vld [vmem:[%s1346_s24] sm:$0xff]  ;;  %s1157_s30 = smov 88  }
  0x5f   : > { %408 = vperm.xlu0 %987, %v1363_v2   ;;  %478 = vperm.xlu1 %989, %v1363_v2   ;;  %v1155_v8 = vmov 2   ;;  %v1156_v9 = vmov 0   ;;  %v324_v11 = vcombine.high %v320_v10, %v320_v10  ;;  %v321_v12 = vld [vmem:[%s1346_s24 + $0x8] sm:$0xf]  ;;  %v322_v15 = vld [vmem:[%s1354_s16] sm:$0xf] }
  0x60   : > { %v1375_v13 = vmax.f32 %v321_v12, 0.0  ;;  %v1382_v19 = vmax.f32 %v320_v10, 0.0  ;;  %v1384_v20 = vmax.f32 %v322_v15, 0.0  ;;  %s1158_s29 = smov 48   ;;  %vm359_vm0 = vcmask 719872   ;;  %s1159_s13 = smov 126  }
  0x61   : > { %v1377_v14 = vmax.f32 %v324_v11, 0.0  ;;  %vm389_vm1 = vcmask 392192   ;;  %vm1161_vm2 = vmmov 0   ;;  %s1162_s9 = smov 124   ;;  %vm551_vm3 = vcmask 1031168   ;;  %s903_s11 = smul.u32 24, %s1342_s0 }
  0x62   : > { %vm573_vm4 = vcmask 1014784   ;;  %vm594_vm5 = vcmask 1043456   ;;  %vm590_vm6 = vcmask 31744   ;;  %s904_s24 = smul.u32 384, %s1136_s21  ;;  %s749_s21 = scalar_lea.sflag [#allocation4], %s1342_s0 }
  0x63   : > { %988 = vset.pattern.permute.xlu0 %v1150_v3  ;;  %990 = vset.pattern.permute.xlu1 %v1151_v4  ;;  %s311_s12 = scalar_lea.vmem [#allocation7], %s903_s11  ;;  %p1550_p3 = scmp.ne.s32.totalorder %s1542_s6, 0 }
  0x64   : > { %439 = vperm.xlu0 %988, %v1363_v2   ;;  %509 = vperm.xlu1 %990, %v1363_v2   ;;  %s765_s10 = sshll.u32 %s311_s12, 4  ;;  %s1482_s15 = scalar_lea.hbm %s1536_s5, %s904_s24  ;;  %s1484_s10 = int_to_ptr.vmem [resolvable:$true] %s765_s10 }
  0x68   : > { %991 = vset.pattern.permute.xlu1 %v1152_v5  ;;  %992 = vset.pattern.permute.xlu0 %v1153_v6 }
  0x69   : > { %340 = vperm.xlu1 %991, %v1363_v2   ;;  %400 = vperm.xlu0 %992, %v1363_v2  }
  0x6d   : > { %993 = vset.pattern.permute.xlu1 %v1154_v7  ;;  %995 = vset.pattern.permute.xlu0 %v1156_v9 }
  0x6e   : > { %370 = vperm.xlu1 %993, %v1363_v2  }
  0x72   : > { %994 = vset.pattern.permute.xlu1 %v1155_v8 }
  0x73   : > { %470 = vperm.xlu1 %994, %v1363_v2  }
  0xde   : > { %v409_v16 = vpop.permute.xlu0 %408  ;;  %v479_v26 = vpop.permute.xlu1 %478 }
  0xdf   : > { %v413_v17 = vmul.f32 %v409_v16, %v1375_v13  ;;  %v412_v18 = vmul.f32 %v409_v16, %v1377_v14  ;;  %v411_v21 = vmul.f32 %v409_v16, %v1382_v19  ;;  %v414_v22 = vmul.f32 %v409_v16, %v1384_v20 }
  0xe0   : > { %v482_v27 = vmul.f32 %v479_v26, %v1377_v14  ;;  %v484_v29 = vmul.f32 %v479_v26, %v1384_v20  ;;  %v483_v30 = vmul.f32 %v479_v26, %v1375_v13  ;;  %v481_v32 = vmul.f32 %v479_v26, %v1382_v19 }
  0xe1   : > { %423 = vrot.lane.b32.xlu1 %v413_v17, %s1157_s30  ;;  %421 = vrot.lane.b32.xlu0 %v412_v18, %s1157_s30 }
  0xe3   : > { %v440_v23 = vpop.permute.xlu0 %439  ;;  %v510_v31 = vpop.permute.xlu1 %509 }
  0xe4   : > { %v444_v24 = vmul.f32 %v440_v23, %v1375_v13  ;;  %v443_v25 = vmul.f32 %v440_v23, %v1377_v14  ;;  %v445_v28 = vmul.f32 %v440_v23, %v1384_v20  ;;  %v442_v33 = vmul.f32 %v440_v23, %v1382_v19 }
  0xe5   : > { %419 = vrot.lane.b32.xlu1 %v411_v21, %s1157_s30  ;;  %425 = vrot.lane.b32.xlu0 %v414_v22, %s1157_s30  ;;  %v514_v34 = vmul.f32 %v510_v31, %v1375_v13  ;;  %v513_v35 = vmul.f32 %v510_v31, %v1377_v14  ;;  %v512_v37 = vmul.f32 %v510_v31, %v1382_v19  ;;  %v1160_v22 = vmov 0.0  }
  0xe6   : > { %v515_v38 = vmul.f32 %v510_v31, %v1384_v20  ;;  %668 = vmatprep.mubr.f32.mxu0 %v1160_v22  ;;  %895 = vmatprep.subr.mxu1 %v1160_v22 }
  0xe7   : > { %897 = vmatprep.mubr.msk.f32.mxu1 %vm1161_vm2, %v1160_v22 }
  0xe8   : > { %v341_v36 = vpop.permute.xlu1 %340  ;;  %v401_v49 = vpop.permute.xlu0 %400 }
  0xe9   : > { %454 = vrot.lane.b32.xlu1 %v444_v24, %s1158_s29  ;;  %452 = vrot.lane.b32.xlu0 %v443_v25, %s1158_s29  ;;  %v344_v39 = vmul.f32 %v341_v36, %v1377_v14  ;;  %v345_v40 = vmul.f32 %v341_v36, %v1375_v13  ;;  %v343_v41 = vmul.f32 %v341_v36, %v1382_v19 }
  0xea   : > { %v346_v43 = vmul.f32 %v341_v36, %v1384_v20  ;;  %v404_v55 = vmul.f32 %v401_v49, %v1377_v14  ;;  %v406_v59 = vmul.f32 %v401_v49, %v1384_v20  ;;  %v403_v10 = vmul.f32 %v401_v49, %v1382_v19 }
  0xed   : > { %491 = vrot.lane.b32.xlu1 %v482_v27, %s1157_s30  ;;  %456 = vrot.lane.b32.xlu0 %v445_v28, %s1158_s29  ;;  %v371_v42 = vpop.permute.xlu1 %370 }
  0xee   : > { %v374_v44 = vmul.f32 %v371_v42, %v1377_v14  ;;  %v375_v45 = vmul.f32 %v371_v42, %v1375_v13  ;;  %v373_v46 = vmul.f32 %v371_v42, %v1382_v19  ;;  %v376_v47 = vmul.f32 %v371_v42, %v1384_v20 }
  0xf1   : > { %495 = vrot.lane.b32.xlu1 %v484_v29, %s1157_s30  ;;  %493 = vrot.lane.b32.xlu0 %v483_v30, %s1157_s30 }
  0xf2   : > { %v1433_v48 = vpop.permute.xlu1 %470 }
  0xf3   : > { %v474_v18 = vmul.f32 %v1433_v48, %v1377_v14  ;;  %v475_v29 = vmul.f32 %v1433_v48, %v1375_v13  ;;  %v473_v30 = vmul.f32 %v1433_v48, %v1382_v19 }
  0xf5   : > { %489 = vrot.lane.b32.xlu1 %v481_v32, %s1157_s30  ;;  %450 = vrot.lane.b32.xlu0 %v442_v33, %s1158_s29 }
  0xf9   : > { %524 = vrot.lane.b32.xlu1 %v514_v34, %s1158_s29  ;;  %522 = vrot.lane.b32.xlu0 %v513_v35, %s1158_s29 }
  0xfd   : > { %520 = vrot.lane.b32.xlu1 %v512_v37, %s1158_s29  ;;  %526 = vrot.lane.b32.xlu0 %v515_v38, %s1158_s29  ;;  %v476_v38 = vmul.f32 %v1433_v48, %v1384_v20 }
 0x101   : > { %333 = vperm.xlu0 %995, %v1363_v2   ;;  %353 = vrot.lane.b32.xlu1 %v344_v39, %s1157_s30  ;;  %v405_v2 = vmul.f32 %v401_v49, %v1375_v13 }
 0x105   : > { %355 = vrot.lane.b32.xlu1 %v345_v40, %s1157_s30  ;;  %351 = vrot.lane.b32.xlu0 %v343_v41, %s1157_s30 }
 0x109   : > { %357 = vrot.lane.b32.xlu1 %v346_v43, %s1157_s30  ;;  %383 = vrot.lane.b32.xlu0 %v374_v44, %s1158_s29  ;;  %v584_v43 = vld [vmem:[%s1535_s4] sm:$0xff]  ;;  %s1058_s30 = scalar_lea.vmem %s1484_s10, 384 }
 0x10a   : > { %p1059_p0 = scmp.ne.s32.totalorder %s1484_s10, %s1058_s30 }
 0x10c   : > { %p1060_p11 = pnand %p1059_p0, %p1550_p3 }
 0x10d   : > { %385 = vrot.lane.b32.xlu1 %v375_v45, %s1158_s29  ;;  %381 = vrot.lane.b32.xlu0 %v373_v46, %s1158_s29 }
 0x10e   : > { %p1061_p6 = pneg %p1060_p11 }
 0x111   : > { %387 = vrot.lane.b32.xlu1 %v376_v47, %s1158_s29  ;;  %s1163_s29 = smov [#allocation7]  }
 0x153   : > { %v424_v50 = vpop.permute.xlu1 %423  ;;  %v422_v51 = vpop.permute.xlu0 %421 }
 0x154   : > { %v428_v54 = vsel %vm359_vm0, %v422_v51, %v424_v50 }
 0x155   : > { %v435_v56 = vadd.f32 %v428_v54, %v404_v55 }
 0x157   : > { %v420_v52 = vpop.permute.xlu1 %419  ;;  %v426_v53 = vpop.permute.xlu0 %425 }
 0x158   : > { %v437_v62 = vadd.f32 %v426_v53, %v406_v59  ;;  %v429_v63 = vsel %vm359_vm0, %v424_v50, %v426_v53  ;;  %v427_v8 = vsel %vm359_vm0, %v420_v52, %v422_v51 }
 0x159   : > { %v436_v5 = vadd.f32 %v429_v63, %v405_v2  ;;  %v434_v11 = vadd.f32 %v427_v8, %v403_v10 }
 0x15b   : > { %v455_v57 = vpop.permute.xlu1 %454  ;;  %v453_v58 = vpop.permute.xlu0 %452 }
 0x15c   : > { %v459_v60 = vsel %vm389_vm1, %v453_v58, %v455_v57 }
 0x15d   : > { %v466_v61 = vadd.f32 %v459_v60, %v435_v56 }
 0x15f   : > { %v492_v0 = vpop.permute.xlu1 %491  ;;  %v457_v1 = vpop.permute.xlu0 %456  ;;  %545 = vrot.lane.b32.xlu0 %v466_v61, %s1159_s13 }
 0x160   : > { %v468_v3 = vadd.f32 %v457_v1, %v437_v62  ;;  %v460_v4 = vsel %vm389_vm1, %v455_v57, %v457_v1 }
 0x161   : > { %v467_v9 = vadd.f32 %v460_v4, %v436_v5 }
 0x162   : > { %549 = vrot.lane.b32.xlu1 %v468_v3, %s1159_s13 }
 0x163   : > { %v496_v6 = vpop.permute.xlu1 %495  ;;  %v494_v7 = vpop.permute.xlu0 %493 }
 0x164   : > { %v498_v16 = vsel %vm359_vm0, %v492_v0, %v494_v7  ;;  %v499_v26 = vsel %vm359_vm0, %v494_v7, %v496_v6  ;;  %v507_v41 = vadd.f32 %v496_v6, %v476_v38 }
 0x165   : > { %v505_v23 = vadd.f32 %v498_v16, %v474_v18  ;;  %v506_v32 = vadd.f32 %v499_v26, %v475_v29  ;;  %v583_v18 = vld [vmem:[%s1534_s3] sm:$0xff] }
 0x166   : > { %547 = vrot.lane.b32.xlu1 %v467_v9, %s1159_s13 }
 0x167   : > { %v490_v12 = vpop.permute.xlu1 %489  ;;  %v451_v15 = vpop.permute.xlu0 %450 }
 0x168   : > { %v458_v17 = vsel %vm389_vm1, %v451_v15, %v453_v58  ;;  %v497_v27 = vsel %vm359_vm0, %v490_v12, %v492_v0 }
 0x169   : > { %v465_v21 = vadd.f32 %v458_v17, %v434_v11  ;;  %v504_v33 = vadd.f32 %v497_v27, %v473_v30 }
 0x16b   : > { %v525_v24 = vpop.permute.xlu1 %524  ;;  %v523_v25 = vpop.permute.xlu0 %522  ;;  %543 = vrot.lane.b32.xlu0 %v465_v21, %s1159_s13  ;;  %s1062_s13 = sshll.u32 %s1163_s29, 4  ;;  %s1063_s13 = int_to_ptr.vmem [resolvable:$false] %s1062_s13 }
 0x16c   : > { %v529_v28 = vsel %vm389_vm1, %v523_v25, %v525_v24  ;;  %p1065_p7 = scmp.lt.s32.totalorder %s1484_s10, %s1063_s13 }
 0x16d   : > { %v536_v31 = vadd.f32 %v529_v28, %v505_v23 }
 0x16f   : > { %v521_v34 = vpop.permute.xlu1 %520  ;;  %v527_v35 = vpop.permute.xlu0 %526  ;;  %567 = vrot.lane.b32.xlu0 %v536_v31, %s1162_s9 }
 0x170   : > { %v528_v36 = vsel %vm389_vm1, %v521_v34, %v523_v25  ;;  %v530_v37 = vsel %vm389_vm1, %v525_v24, %v527_v35  ;;  %v538_v44 = vadd.f32 %v527_v35, %v507_v41 }
 0x171   : > { %v535_v39 = vadd.f32 %v528_v36, %v504_v33  ;;  %v537_v40 = vadd.f32 %v530_v37, %v506_v32 }
 0x173   : > { %565 = vrot.lane.b32.xlu0 %v535_v39, %s1162_s9  ;;  %569 = vrot.lane.b32.xlu1 %v537_v40, %s1162_s9  ;;  %v354_v42 = vpop.permute.xlu1 %353 }
 0x177   : > { %587 = vperm.xlu0 %995, %v584_v43   ;;  %571 = vrot.lane.b32.xlu1 %v538_v44, %s1162_s9  ;;  %v356_v45 = vpop.permute.xlu1 %355  ;;  %s1064_s9 = scalar_lea.vmem %s1063_s13, 768 }
 0x178   : > { %v361_v51 = vsel %vm359_vm0, %v354_v42, %v356_v45  ;;  %p1066_p10 = scmp.lt.s32.totalorder %s1064_s9, %s1058_s30 }
 0x17a   : > { %p1067_p12 = por %p1066_p10, %p1065_p7 }
 0x17b   : > { %v358_v46 = vpop.permute.xlu1 %357 }
 0x17c   : > { %v362_v50 = vsel %vm359_vm0, %v356_v45, %v358_v46  ;;  %p1068_p9 = pnand %p1067_p12, %p1061_p6 }
 0x17f   : > { %v386_v47 = vpop.permute.xlu1 %385 }
 0x180   : > { %v334_v49 = vpop.permute.xlu0 %333 }
 0x181   : > { %v338_v20 = vmul.f32 %v334_v49, %v1375_v13  ;;  %v337_v48 = vmul.f32 %v334_v49, %v1377_v14  ;;  %v336_v57 = vmul.f32 %v334_v49, %v1382_v19 }
 0x183   : > { %v368_v52 = vadd.f32 %v362_v50, %v338_v20  ;;  %v388_v53 = vpop.permute.xlu1 %387  ;;  %v367_v58 = vadd.f32 %v361_v51, %v337_v48 }
 0x184   : > { %v352_v54 = vpop.permute.xlu0 %351  ;;  %v392_v55 = vsel %vm389_vm1, %v386_v47, %v388_v53 }
 0x185   : > { %v398_v56 = vadd.f32 %v392_v55, %v368_v52  ;;  %v360_v59 = vsel %vm359_vm0, %v352_v54, %v354_v42 }
 0x186   : > { %v366_v62 = vadd.f32 %v360_v59, %v336_v57 }
 0x188   : > { %v384_v60 = vpop.permute.xlu0 %383 }
 0x189   : > { %v391_v61 = vsel %vm389_vm1, %v384_v60, %v386_v47 }
 0x18a   : > { %v397_v13 = vadd.f32 %v391_v61, %v367_v58 }
 0x18c   : > { %v382_v63 = vpop.permute.xlu0 %381 }
 0x18d   : > { %v390_v14 = vsel %vm389_vm1, %v382_v63, %v384_v60 }
 0x18e   : > { %v396_v0 = vadd.f32 %v390_v14, %v366_v62 }
 0x1d1   : > { %v546_v1 = vpop.permute.xlu0 %545 }
 0x1d4   : > { %v550_v2 = vpop.permute.xlu1 %549 }
 0x1d8   : > { %v548_v4 = vpop.permute.xlu1 %547 }
 0x1d9   : > { %v553_v6 = vsel %vm551_vm3, %v546_v1, %v548_v4  ;;  %v554_v11 = vsel %vm551_vm3, %v548_v4, %v550_v2 }
 0x1da   : > { %v559_v7 = vadd.f32 %v553_v6, %v397_v13  ;;  %v560_v21 = vadd.f32 %v554_v11, %v398_v56 }
 0x1dd   : > { %v544_v3 = vpop.permute.xlu0 %543 }
 0x1de   : > { %v552_v19 = vsel %vm551_vm3, %v544_v3, %v546_v1 }
 0x1df   : > { %v558_v8 = vadd.f32 %v552_v19, %v396_v0 }
 0x1e1   : > { %v568_v5 = vpop.permute.xlu0 %567 }
 0x1e5   : > { %v566_v9 = vpop.permute.xlu0 %565  ;;  %v570_v10 = vpop.permute.xlu1 %569 }
 0x1e6   : > { %v574_v12 = vsel %vm573_vm4, %v566_v9, %v568_v5  ;;  %v575_v15 = vsel %vm573_vm4, %v568_v5, %v570_v10 }
 0x1e7   : > { %v580_v16 = vadd.f32 %v574_v12, %v558_v8  ;;  %v581_v17 = vadd.f32 %v575_v15, %v559_v7 }
 0x1e9   : > { %885 = vmatprep.subr.msk.mxu0 %vm594_vm5, %v581_v17  ;;  %v572_v22 = vpop.permute.xlu1 %571 }
 0x1ea   : > { %v576_v23 = vsel %vm573_vm4, %v570_v10, %v572_v22  ;;  %886 = vmatpush1.msk.msra.mxu0 %vm594_vm5, %v580_v16 }
 0x1eb   : > { %v582_v24 = vadd.f32 %v576_v23, %v560_v21  ;;  %887 = vmatmul.mubr.msk.f32.vlgmr.msra.gmra.mrb[0].mxu0 %vm590_vm6, %v583_v18 }
 0x1ed   : > { %896 = vmatpush3.msk.msra.mxu1 %vm594_vm5, %v582_v24 }
 0x1ee   : > { %898 = vmatmul.mubr.msk.f32.vlgmr.msra.gmra.mrb[0].mxu1 %vm590_vm6, %v583_v18 }
 0x1f6   : > { %v588_v25 = vpop.permute.xlu0 %587 }
 0x2be   : > { %v670_v26 = vpop.f32.mrb[0].mxu0 }
 0x2bf   : > { %v671_v27 = vadd.f32 %v670_v26, %v588_v25  ;;  %v672_v28 = vpop.f32.mrb[1].mxu0 }
 0x2c0   : > { %v673_v29 = vadd.f32 %v672_v28, %v588_v25 }
 0x2c1   : > { %745 = vst [vmem:[%s311_s12] sm:$0xff] %v671_v27  ;;  %v741_v30 = vpop.f32.mrb[0].mxu1 }
 0x2c2   : > { %746 = vst [vmem:[%s311_s12 + $0x8] sm:$0xff] %v673_v29  ;;  %v742_v31 = vadd.f32 %v741_v30, %v588_v25  ;;  %v899_v32 = vpop.f32.mrb[1].mxu1 }
 0x2c4   : > { %747 = vst [vmem:[%s311_s12 + $0x10] sm:$0xff] %v742_v31 }
 0x2c5   : > { %1071 = shalt.err (!%p1068_p9)
}
 0x2c6   : > { %s1072_s0 = scalar_lea.hbm %s1482_s15, 384  ;;  %s1076_s27 = scalar_lea.hbm %s1536_s5, 768 }
 0x2c7   : > { %p1073_p1 = scmp.ne.s32.totalorder %s1482_s15, %s1072_s0  ;;  %p1077_p4 = scmp.lt.u32.totalorder %s1482_s15, %s1536_s5 }
 0x2c8   : > { %p1078_p13 = scmp.lt.u32.totalorder %s1076_s27, %s1072_s0  ;;  %p1080_p0 = scmp.lt.u32.totalorder %s1072_s0, %s1482_s15 }
 0x2c9   : > { %p1074_p5 = pnand %p1073_p1, %p1550_p3 }
 0x2ca   : > { %p1079_p8 = por %p1078_p13, %p1077_p4 }
 0x2cb   : > { %p1075_p2 = pneg %p1074_p5 }
 0x2cc   : > { %p1081_p11 = por %p1080_p0, %p1079_p8 }
 0x2ce   : > { %p1082_p6 = pnand %p1081_p11, %p1075_p2 }
 0x2d0   : > { %1085 = shalt.err (!%p1082_p6)
}
 0x2d1   : > { %909 = dma.vmem_to_hbm [thread:$0]  (%p1550_p3), %s1484_s10, 384, %s1482_s15, %s749_s21  }
 0x2d2 PF: > { %s777_s24 = sand.u32 1, %s1124_s18   ;;  %p1551_p7 = scmp.ne.s32.totalorder %s1543_s8, 0 }
 0x2d3   : > { %p1552_p10 = scmp.ge.s32.totalorder %s1144_s23, 2  ;;  %s778_s12 = scalar_lea.sflag [#allocation4], %s777_s24 }
 0x2d5   : > { %p919_p12 = pnand %p1552_p10, %p1551_p7 }
 0x2d7   : > { %1119 = dma.done.wait (!%p919_p12), %s778_s12, 384  }
 0x2d8   : > { %1121 = vsyncadd (!%p919_p12), %s778_s12, 4294966912  ;;  %s24_s23 = sadd.s32 1, %s1144_s23   ;;  %s1553_s18 = smov %s1128_s19 }
 0x2d9   : > { %p21_p9 = scmp.ge.s32.totalorder %s24_s23, 4   ;;  %s1554_s19 = smov %s1132_s20 }
 0x2da   : > { %s1555_s20 = smov %s1250_s7  ;;  %s1556_s21 = smov %s1140_s22 }
 0x2db   : > { %s1557_s22 = smov %s1559_s26  ;;  %23 = sbr.rel (!%p21_p9) target bundleno = 10 (0xa), region = 98 }
 0x2e2   :  { %783 = vsyncpa [#allocation3], 1 }
 0x2e3   :  { %785 = vsyncpa [#allocation3 + $0x1], 1 }
 0x2e4   :  { %786 = vsyncpa [#allocation6], 1 }
 0x2e5   :  { %788 = vsyncpa [#allocation6 + $0x1], 1 }
 0x2e6   :  { %789 = vsyncpa [#allocation4], 1 }
 0x2e7   :  { %791 = vsyncpa [#allocation4 + $0x1], 1 }

</bundles_post_ra>
